<compile_context>
chip_gen: v5e
topology: v5e:2x2
jax: 0.10.0
libtpu: 0.0.40
codegen_flags: <defaults>
</compile_context>

<pallas_src>
import jax
import jax.numpy as jnp
from jax import lax
from jax.experimental import pallas as pl
from jax.experimental.pallas import tpu as pltpu

S = 54            # 6*3*3 sticker positions
S_PAD = 64        # state lanes padded to a multiple of 8 (K of the expansion dot)
NCLS = 12         # embedding vocabulary
EXP = NCLS * S    # 648 one-hot lanes, layout l = c*54 + p


def _round_up(x, m):
    return ((x + m - 1) // m) * m


# ----------------------------- Pallas kernel --------------------------------
def qnetwork_kernel(s_ref, r_ref, cls_ref, w1_ref, b1_ref, w2_ref, b2_ref,
                    wfc_ref, bfc_ref, o_ref):
    r = r_ref[...]                                             # (64, 648)
    cdtype = r.dtype                                           # bf16 or f32
    s = s_ref[...].astype(jnp.float32).astype(cdtype)          # (TB, 64) small ints

    # In-kernel embedding gather via one-hot (all MXU/VPU, no gather op):
    # s12[b, c*54+p] = state[b, p]  (exact integers even in bf16)
    s12 = jnp.dot(s, r, preferred_element_type=jnp.float32)    # (TB, 648)
    onehot = jnp.where(jnp.abs(s12 - cls_ref[...]) < 0.5, 1.0, 0.0).astype(cdtype)

    # embedding + conv1 (folded into one dense matmul), ReLU
    y1 = jnp.dot(onehot, w1_ref[...], preferred_element_type=jnp.float32) + b1_ref[...]
    y1 = jnp.maximum(y1, 0.0).astype(cdtype)                   # (TB, 144)

    # conv2 (folded), ReLU
    y2 = jnp.dot(y1, w2_ref[...], preferred_element_type=jnp.float32) + b2_ref[...]
    y2 = jnp.maximum(y2, 0.0).astype(cdtype)                   # (TB, 48)

    # fc
    o_ref[...] = (jnp.dot(y2, wfc_ref[...], preferred_element_type=jnp.float32)
                  + bfc_ref[...])                              # (TB, 18) f32


# --------------------- one-time parameter repacking --------------------------
def pack_params(params, dtype=jnp.bfloat16):
    """Fold embedding + conv sliding windows + torch flatten order into dense matmuls.

    Lane layouts (C-ordered):
      state lane  p  = ci*9 + d*3 + h                 (6,3,3)    -> 54
      one-hot lane   = c*54 + p                       (12,54)    -> 648
      emb/x lane     = p*4 + w   == (ci,d,h,w)        (6,3,3,4)  -> 216
      conv1 out lane = ((od*2+oh)*3+ow)*12 + co       (2,2,3,12) -> 144
      conv2 out lane = ow2*24 + co2                   (2,24)     -> 48
    """
    emb = params["emb"].astype(jnp.float32)                    # (12, 4)
    w1, b1 = params["w1"].astype(jnp.float32), params["b1"].astype(jnp.float32)
    w2, b2 = params["w2"].astype(jnp.float32), params["b2"].astype(jnp.float32)
    wfc, bfc = params["wfc"].astype(jnp.float32), params["bfc"].astype(jnp.float32)

    # conv1 -> dense (216, 144)
    W1 = jnp.zeros((6, 3, 3, 4, 2, 2, 3, 12), jnp.float32)     # (ci,id,ih,iw, od,oh,ow,co)
    for kd in range(2):
        for kh in range(2):
            for kw in range(2):
                tap = w1[:, :, kd, kh, kw].T                   # (6 ci, 12 co)
                for od in range(2):
                    for oh in range(2):
                        for ow in range(3):
                            W1 = W1.at[:, od + kd, oh + kh, ow + kw,
                                       od, oh, ow, :].set(tap)
    w1_dense = W1.reshape(216, 144)

    # embedding folded into conv1:  w1e[c*54+p, f] = sum_w emb[c,w] * w1_dense[p*4+w, f]
    w1e = jnp.einsum("cw,pwf->cpf", emb, w1_dense.reshape(S, 4, 144)).reshape(EXP, 144)
    b1_big = jnp.tile(b1, 12).reshape(1, 144)

    # conv2 -> dense (144, 48)
    W2 = jnp.zeros((2, 2, 3, 12, 2, 24), jnp.float32)          # (id,ih,iw,co1, ow2,co2)
    for kd in range(2):
        for kh in range(2):
            for kw in range(2):
                tap = w2[:, :, kd, kh, kw].T                   # (12 co1, 24 co2)
                for ow2 in range(2):
                    W2 = W2.at[kd, kh, ow2 + kw, :, ow2, :].set(tap)
    w2_dense = W2.reshape(144, 48)
    b2_big = jnp.tile(b2, 2).reshape(1, 48)

    # fc: torch flatten index is co2*2 + ow2; our y2 lane is ow2*24 + co2.
    wfc_dense = jnp.transpose(wfc.reshape(18, 24, 2), (2, 1, 0)).reshape(48, 18)
    bfc_big = bfc.reshape(1, 18)

    # Expansion matrix: s12[:, c*54+p] = state[:, p].  Rows 54..63 (lane pad) stay 0.
    R = jnp.zeros((S_PAD, EXP), jnp.float32)
    p_idx = jnp.arange(S)
    for c in range(NCLS):
        R = R.at[p_idx, c * S + p_idx].set(1.0)

    # Class pattern: cls[0, c*54+p] = c  (compared against s12 to form the one-hot).
    cls = jnp.repeat(jnp.arange(NCLS, dtype=jnp.float32), S).reshape(1, EXP)

    return {
        "r": R.astype(dtype), "cls": cls,                      # cls stays f32 (exact compare)
        "w1": w1e.astype(dtype), "b1": b1_big,
        "w2": w2_dense.astype(dtype), "b2": b2_big,
        "wfc": wfc_dense.astype(dtype), "bfc": bfc_big,
    }


# ------------------------------- forward ------------------------------------
def qnetwork_forward(state, packed, *, block_b=2048):
    B = state.shape[0]
    s = state.reshape(B, S).astype(jnp.int32)

    # Block-size choice: multiple of 8 always; >= 2 grid steps when B > 8 so the
    # ("parallel",) batch axis shards across both v7x TensorCores.
    block_b = max(8, (int(block_b) // 8) * 8)
    if B <= 8:
        tb = 8
    else:
        tb = min(block_b, _round_up((B + 1) // 2, 8))
    Bp = _round_up(B, tb)

    # Pad the cheap int32 state (batch -> Bp, lanes 54 -> 64) instead of padding
    # f32 activations; the padded R rows are zero so padding never affects results.
    s = jnp.pad(s, ((0, Bp - B), (0, S_PAD - S)))

    flops = 2 * Bp * (S_PAD * EXP + EXP * 144 + 144 * 48 + 48 * 18)
    bytes_accessed = (Bp * (S_PAD * 4 + 18 * 4)
                      + sum(int(v.size) * v.dtype.itemsize for v in packed.values()))

    out = pl.pallas_call(
        qnetwork_kernel,
        out_shape=jax.ShapeDtypeStruct((Bp, 18), jnp.float32),
        grid_spec=pltpu.PrefetchScalarGridSpec(
            num_scalar_prefetch=0,
            grid=(Bp // tb,),
            in_specs=[
                pl.BlockSpec((tb, S_PAD), lambda i: (i, 0)),    # int32 state block
                pl.BlockSpec((S_PAD, EXP), lambda i: (0, 0)),   # expansion matrix (resident)
                pl.BlockSpec((1, EXP), lambda i: (0, 0)),       # class pattern
                pl.BlockSpec((EXP, 144), lambda i: (0, 0)),     # emb+conv1 folded
                pl.BlockSpec((1, 144), lambda i: (0, 0)),
                pl.BlockSpec((144, 48), lambda i: (0, 0)),      # conv2 folded
                pl.BlockSpec((1, 48), lambda i: (0, 0)),
                pl.BlockSpec((48, 18), lambda i: (0, 0)),       # fc
                pl.BlockSpec((1, 18), lambda i: (0, 0)),
            ],
            out_specs=pl.BlockSpec((tb, 18), lambda i: (i, 0)),
        ),
        compiler_params=pltpu.CompilerParams(
            dimension_semantics=("parallel",),
            vmem_limit_bytes=48 * 1024 * 1024),
        cost_estimate=pl.CostEstimate(flops=flops, transcendentals=0,
                                      bytes_accessed=bytes_accessed),
    )(s, packed["r"], packed["cls"], packed["w1"], packed["b1"],
      packed["w2"], packed["b2"], packed["wfc"], packed["bfc"])
    return out[:B]


# ------------------------------ reference ------------------------------------
def qnetwork_reference(state, params):
    """Pure-JAX reference mirroring the PyTorch forward exactly."""
    emb = params["emb"][state]                                            # (B,6,3,3,4)
    dn = ("NCDHW", "OIDHW", "NCDHW")
    y1 = lax.conv_general_dilated(emb, params["w1"], (1, 1, 1), "VALID",
                                  dimension_numbers=dn)
    y1 = jnp.maximum(y1 + params["b1"][None, :, None, None, None], 0.0)   # (B,12,2,2,3)
    y2 = lax.conv_general_dilated(y1, params["w2"], (1, 1, 1), "VALID",
                                  dimension_numbers=dn)
    y2 = jnp.maximum(y2 + params["b2"][None, :, None, None, None], 0.0)   # (B,24,1,1,2)
    flat = y2.reshape(y2.shape[0], -1)                                    # (B, 48)
    return flat @ params["wfc"].T + params["bfc"]                         # (B, 18)


if __name__ == "__main__":
    key = jax.random.PRNGKey(0)
    ks = jax.random.split(key, 9)
    params = {
        "emb": jax.random.normal(ks[0], (12, 4), jnp.float32),
        "w1": jax.random.normal(ks[1], (12, 6, 2, 2, 2), jnp.float32) * 0.2,
        "b1": jax.random.normal(ks[2], (12,), jnp.float32) * 0.1,
        "w2": jax.random.normal(ks[3], (24, 12, 2, 2, 2), jnp.float32) * 0.15,
        "b2": jax.random.normal(ks[4], (24,), jnp.float32) * 0.1,
        "wfc": jax.random.normal(ks[5], (18, 48), jnp.float32) * 0.1,
        "bfc": jax.random.normal(ks[6], (18,), jnp.float32) * 0.1,
    }
    packed_f32 = pack_params(params, dtype=jnp.float32)   # exactness-check path
    packed_bf16 = pack_params(params)                     # default perf path (bf16)

    # Rubik's-cube-like state: 6 faces of 3x3 stickers, token ids in [0, 12).
    state = jax.random.randint(ks[7], (2, 6, 3, 3), 0, 12, dtype=jnp.int32)
    ref = qnetwork_reference(state, params)

    out_f32 = jax.block_until_ready(qnetwork_forward(state, packed_f32))
    assert out_f32.shape == (2, 18)
    assert jnp.allclose(out_f32, ref, atol=1e-3, rtol=1e-3), "f32 mismatch (B=2)"

    out_bf16 = jax.block_until_ready(qnetwork_forward(state, packed_bf16))
    # bf16 weights/activations with f32 accumulation: ~2^-8 relative rounding.
    assert jnp.allclose(out_bf16, ref, atol=5e-2, rtol=5e-2), "bf16 mismatch (B=2)"

    # Multi-step grid + batch/lane padding path.
    state2 = jax.random.randint(ks[8], (50, 6, 3, 3), 0, 12, dtype=jnp.int32)
    ref2 = qnetwork_reference(state2, params)
    out2_f32 = jax.block_until_ready(qnetwork_forward(state2, packed_f32, block_b=16))
    assert out2_f32.shape == (50, 18)
    assert jnp.allclose(out2_f32, ref2, atol=1e-3, rtol=1e-3), "f32 mismatch (B=50)"
    out2_bf16 = jax.block_until_ready(qnetwork_forward(state2, packed_bf16))
    assert jnp.allclose(out2_bf16, ref2, atol=5e-2, rtol=5e-2), "bf16 mismatch (B=50)"

    print("KERNEL_OK")
</pallas_src>

<mosaic_0001>
module attributes {stable_mosaic.version = 11 : i64} {
  func.func @qnetwork_kernel(%arg0: i32, %arg1: memref<8x64xi32, #tpu.memory_space<vmem>>, %arg2: memref<64x648xf32, #tpu.memory_space<vmem>>, %arg3: memref<1x648xf32, #tpu.memory_space<vmem>>, %arg4: memref<648x144xf32, #tpu.memory_space<vmem>>, %arg5: memref<1x144xf32, #tpu.memory_space<vmem>>, %arg6: memref<144x48xf32, #tpu.memory_space<vmem>>, %arg7: memref<1x48xf32, #tpu.memory_space<vmem>>, %arg8: memref<48x18xf32, #tpu.memory_space<vmem>>, %arg9: memref<1x18xf32, #tpu.memory_space<vmem>>, %arg10: memref<8x18xf32, #tpu.memory_space<vmem>>) attributes {dimension_semantics = [#tpu.dimension_semantics<parallel>], iteration_bounds = array<i64: 1>, scalar_prefetch = 0 : i64, scratch_operands = 0 : i64, tpu.core_type = #tpu.core_type<tc>, window_params = [{transform_indices = @transform_0, window_bounds = array<i64: 8, 64>}, {pipeline_mode = #tpu.pipeline_mode<synchronous>, transform_indices = @transform_1, window_bounds = array<i64: 64, 648>}, {pipeline_mode = #tpu.pipeline_mode<synchronous>, transform_indices = @transform_2, window_bounds = array<i64: 1, 648>}, {pipeline_mode = #tpu.pipeline_mode<synchronous>, transform_indices = @transform_3, window_bounds = array<i64: 648, 144>}, {pipeline_mode = #tpu.pipeline_mode<synchronous>, transform_indices = @transform_4, window_bounds = array<i64: 1, 144>}, {pipeline_mode = #tpu.pipeline_mode<synchronous>, transform_indices = @transform_5, window_bounds = array<i64: 144, 48>}, {pipeline_mode = #tpu.pipeline_mode<synchronous>, transform_indices = @transform_6, window_bounds = array<i64: 1, 48>}, {pipeline_mode = #tpu.pipeline_mode<synchronous>, transform_indices = @transform_7, window_bounds = array<i64: 48, 18>}, {pipeline_mode = #tpu.pipeline_mode<synchronous>, transform_indices = @transform_8, window_bounds = array<i64: 1, 18>}, {transform_indices = @transform_9, window_bounds = array<i64: 8, 18>}]} {
    %c0 = arith.constant 0 : index
    %c0_0 = arith.constant 0 : index
    %0 = vector.load %arg2[%c0, %c0_0] : memref<64x648xf32, #tpu.memory_space<vmem>>, vector<64x648xf32>
    %c0_1 = arith.constant 0 : index
    %c0_2 = arith.constant 0 : index
    %1 = vector.load %arg1[%c0_1, %c0_2] : memref<8x64xi32, #tpu.memory_space<vmem>>, vector<8x64xi32>
    %2 = arith.sitofp %1 : vector<8x64xi32> to vector<8x64xf32>
    %cst = arith.constant dense<0.000000e+00> : vector<8x648xf32>
    %3 = tpu.matmul %2, %0, %cst {dimension_numbers = #tpu.dot_dimension_numbers<[1], [0], [0], [1], [0, 0, 1, 1], [], []>} : vector<8x64xf32>, vector<64x648xf32>, vector<8x648xf32> -> vector<8x648xf32>
    %c0_3 = arith.constant 0 : index
    %c0_4 = arith.constant 0 : index
    %4 = vector.load %arg3[%c0_3, %c0_4] : memref<1x648xf32, #tpu.memory_space<vmem>>, vector<1x648xf32>
    %5 = vector.broadcast %4 : vector<1x648xf32> to vector<8x648xf32>
    %6 = arith.subf %3, %5 : vector<8x648xf32>
    %7 = math.absf %6 : vector<8x648xf32>
    %cst_5 = arith.constant 5.000000e-01 : f32
    %8 = vector.broadcast %cst_5 : f32 to vector<8x648xf32>
    %9 = arith.cmpf olt, %7, %8 : vector<8x648xf32>
    %cst_6 = arith.constant 1.000000e+00 : f32
    %cst_7 = arith.constant 0.000000e+00 : f32
    %10 = vector.broadcast %cst_6 : f32 to vector<8x648xf32>
    %11 = vector.broadcast %cst_7 : f32 to vector<8x648xf32>
    %12 = arith.select %9, %10, %11 : vector<8x648xi1>, vector<8x648xf32>
    %c0_8 = arith.constant 0 : index
    %c0_9 = arith.constant 0 : index
    %13 = vector.load %arg4[%c0_8, %c0_9] : memref<648x144xf32, #tpu.memory_space<vmem>>, vector<648x144xf32>
    %cst_10 = arith.constant dense<0.000000e+00> : vector<8x144xf32>
    %14 = tpu.matmul %12, %13, %cst_10 {dimension_numbers = #tpu.dot_dimension_numbers<[1], [0], [0], [1], [0, 0, 1, 1], [], []>} : vector<8x648xf32>, vector<648x144xf32>, vector<8x144xf32> -> vector<8x144xf32>
    %c0_11 = arith.constant 0 : index
    %c0_12 = arith.constant 0 : index
    %15 = vector.load %arg5[%c0_11, %c0_12] : memref<1x144xf32, #tpu.memory_space<vmem>>, vector<1x144xf32>
    %16 = vector.broadcast %15 : vector<1x144xf32> to vector<8x144xf32>
    %17 = arith.addf %14, %16 : vector<8x144xf32>
    %cst_13 = arith.constant 0.000000e+00 : f32
    %18 = vector.broadcast %cst_13 : f32 to vector<8x144xf32>
    %19 = arith.maximumf %17, %18 : vector<8x144xf32>
    %c0_14 = arith.constant 0 : index
    %c0_15 = arith.constant 0 : index
    %20 = vector.load %arg6[%c0_14, %c0_15] : memref<144x48xf32, #tpu.memory_space<vmem>>, vector<144x48xf32>
    %cst_16 = arith.constant dense<0.000000e+00> : vector<8x48xf32>
    %21 = tpu.matmul %19, %20, %cst_16 {dimension_numbers = #tpu.dot_dimension_numbers<[1], [0], [0], [1], [0, 0, 1, 1], [], []>} : vector<8x144xf32>, vector<144x48xf32>, vector<8x48xf32> -> vector<8x48xf32>
    %c0_17 = arith.constant 0 : index
    %c0_18 = arith.constant 0 : index
    %22 = vector.load %arg7[%c0_17, %c0_18] : memref<1x48xf32, #tpu.memory_space<vmem>>, vector<1x48xf32>
    %23 = vector.broadcast %22 : vector<1x48xf32> to vector<8x48xf32>
    %24 = arith.addf %21, %23 : vector<8x48xf32>
    %cst_19 = arith.constant 0.000000e+00 : f32
    %25 = vector.broadcast %cst_19 : f32 to vector<8x48xf32>
    %26 = arith.maximumf %24, %25 : vector<8x48xf32>
    %c0_20 = arith.constant 0 : index
    %c0_21 = arith.constant 0 : index
    %27 = vector.load %arg8[%c0_20, %c0_21] : memref<48x18xf32, #tpu.memory_space<vmem>>, vector<48x18xf32>
    %cst_22 = arith.constant dense<0.000000e+00> : vector<8x18xf32>
    %28 = tpu.matmul %26, %27, %cst_22 {dimension_numbers = #tpu.dot_dimension_numbers<[1], [0], [0], [1], [0, 0, 1, 1], [], []>} : vector<8x48xf32>, vector<48x18xf32>, vector<8x18xf32> -> vector<8x18xf32>
    %c0_23 = arith.constant 0 : index
    %c0_24 = arith.constant 0 : index
    %29 = vector.load %arg9[%c0_23, %c0_24] : memref<1x18xf32, #tpu.memory_space<vmem>>, vector<1x18xf32>
    %30 = vector.broadcast %29 : vector<1x18xf32> to vector<8x18xf32>
    %31 = arith.addf %28, %30 : vector<8x18xf32>
    %c0_25 = arith.constant 0 : index
    %c0_26 = arith.constant 0 : index
    %32 = vector.load %arg10[%c0_25, %c0_26] : memref<8x18xf32, #tpu.memory_space<vmem>>, vector<8x18xf32>
    tpu.vector_store %arg10[%c0_25, %c0_26], %31 {strides = array<i32>} : memref<8x18xf32, #tpu.memory_space<vmem>>, vector<8x18xf32>,
    return
  }
  func.func @transform_0(%arg0: i32) -> (i32, i32) {
    %c0_i32 = arith.constant 0 : i32
    %c0_i32_0 = arith.constant 0 : i32
    return %arg0, %c0_i32 : i32, i32
  }
  func.func @transform_1(%arg0: i32) -> (i32, i32) {
    %c0_i32 = arith.constant 0 : i32
    %c0_i32_0 = arith.constant 0 : i32
    %c0_i32_1 = arith.constant 0 : i32
    return %c0_i32, %c0_i32_0 : i32, i32
  }
  func.func @transform_2(%arg0: i32) -> (i32, i32) {
    %c0_i32 = arith.constant 0 : i32
    %c0_i32_0 = arith.constant 0 : i32
    %c0_i32_1 = arith.constant 0 : i32
    return %c0_i32, %c0_i32_0 : i32, i32
  }
  func.func @transform_3(%arg0: i32) -> (i32, i32) {
    %c0_i32 = arith.constant 0 : i32
    %c0_i32_0 = arith.constant 0 : i32
    %c0_i32_1 = arith.constant 0 : i32
    return %c0_i32, %c0_i32_0 : i32, i32
  }
  func.func @transform_4(%arg0: i32) -> (i32, i32) {
    %c0_i32 = arith.constant 0 : i32
    %c0_i32_0 = arith.constant 0 : i32
    %c0_i32_1 = arith.constant 0 : i32
    return %c0_i32, %c0_i32_0 : i32, i32
  }
  func.func @transform_5(%arg0: i32) -> (i32, i32) {
    %c0_i32 = arith.constant 0 : i32
    %c0_i32_0 = arith.constant 0 : i32
    %c0_i32_1 = arith.constant 0 : i32
    return %c0_i32, %c0_i32_0 : i32, i32
  }
  func.func @transform_6(%arg0: i32) -> (i32, i32) {
    %c0_i32 = arith.constant 0 : i32
    %c0_i32_0 = arith.constant 0 : i32
    %c0_i32_1 = arith.constant 0 : i32
    return %c0_i32, %c0_i32_0 : i32, i32
  }
  func.func @transform_7(%arg0: i32) -> (i32, i32) {
    %c0_i32 = arith.constant 0 : i32
    %c0_i32_0 = arith.constant 0 : i32
    %c0_i32_1 = arith.constant 0 : i32
    return %c0_i32, %c0_i32_0 : i32, i32
  }
  func.func @transform_8(%arg0: i32) -> (i32, i32) {
    %c0_i32 = arith.constant 0 : i32
    %c0_i32_0 = arith.constant 0 : i32
    %c0_i32_1 = arith.constant 0 : i32
    return %c0_i32, %c0_i32_0 : i32, i32
  }
  func.func @transform_9(%arg0: i32) -> (i32, i32) {
    %c0_i32 = arith.constant 0 : i32
    %c0_i32_0 = arith.constant 0 : i32
    return %arg0, %c0_i32 : i32, i32
  }
}

</mosaic_0001>

<bundles_post_ra>
// kernel: tpu_custom_call.1
= control target key start
LH: loop header
LB: loop body
LE: loop exit
PB: predicated region body
PF: predicated region fallthrough
CT: control target
= control target key end

     0   :  { %vm83_vm0 = vcmask 523264   ;;  %s1676_s0 = inlined_call_operand.vmem [shape: s32[8,64], index: 0, kind: input, shape index: {}]   ;;  %s1677_s1 = inlined_call_operand.vmem [shape: f32[64,648], index: 1, kind: input, shape index: {}]   ;;  %s1678_s2 = inlined_call_operand.vmem [shape: f32[1,648], index: 2, kind: input, shape index: {}]   ;;  %s1679_s3 = inlined_call_operand.vmem [shape: f32[648,144], index: 3, kind: input, shape index: {}]   ;;  %s1680_s4 = inlined_call_operand.vmem [shape: f32[1,144], index: 4, kind: input, shape index: {}]   ;;  %s1681_s5 = inlined_call_operand.vmem [shape: f32[144,48], index: 5, kind: input, shape index: {}]   ;;  %s1682_s6 = inlined_call_operand.vmem [shape: f32[1,48], index: 6, kind: input, shape index: {}]   ;;  %s1683_s7 = inlined_call_operand.vmem [shape: f32[48,18], index: 7, kind: input, shape index: {}]   ;;  %s1684_s8 = inlined_call_operand.vmem [shape: f32[1,18], index: 8, kind: input, shape index: {}]   ;;  %s1685_s9 = inlined_call_operand.hbm [shape: f32[8,18], index: 9, kind: output, shape index: {}]  }
   0x1   :  { %v75_v0 = vld [vmem:[%s1677_s1 + $0x150] sm:$0xff]  ;;  %v76_v1 = vld [vmem:[%s1677_s1 + $0x158] sm:$0xff]  ;;  %v77_v2 = vld [vmem:[%s1677_s1 + $0x160] sm:$0xff] }
   0x2   :  { %95 = vmatpush.msra.mxu0 %v75_v0  ;;  %115 = vmatpush.msra.mxu1 %v76_v1  ;;  %v69_v3 = vld [vmem:[%s1677_s1 + $0x120] sm:$0xff]  ;;  %v70_v4 = vld [vmem:[%s1677_s1 + $0x128] sm:$0xff]  ;;  %v71_v5 = vld [vmem:[%s1677_s1 + $0x130] sm:$0xff] }
   0x3   :  { %135 = vmatpush.msra.mxu2 %v77_v2  ;;  %v63_v6 = vld [vmem:[%s1677_s1 + $0xf0] sm:$0xff]  ;;  %v64_v7 = vld [vmem:[%s1677_s1 + $0xf8] sm:$0xff]  ;;  %v65_v8 = vld [vmem:[%s1677_s1 + $0x100] sm:$0xff] }
   0x4   :  { %96 = vmatpush.msra.mxu0 %v69_v3  ;;  %116 = vmatpush.msra.mxu1 %v70_v4  ;;  %v57_v9 = vld [vmem:[%s1677_s1 + $0xc0] sm:$0xff]  ;;  %v58_v10 = vld [vmem:[%s1677_s1 + $0xc8] sm:$0xff]  ;;  %v59_v12 = vld [vmem:[%s1677_s1 + $0xd0] sm:$0xff] }
   0x5   :  { %136 = vmatpush.msra.mxu2 %v71_v5  ;;  %v78_v11 = vld [vmem:[%s1677_s1 + $0x168] sm:$0xff]  ;;  %v72_v13 = vld [vmem:[%s1677_s1 + $0x138] sm:$0xff]  ;;  %v51_v14 = vld [vmem:[%s1677_s1 + $0x90] sm:$0xff] }
   0x6   :  { %97 = vmatpush.msra.mxu0 %v63_v6  ;;  %117 = vmatpush.msra.mxu1 %v64_v7  ;;  %v52_v15 = vld [vmem:[%s1677_s1 + $0x98] sm:$0xff]  ;;  %v53_v16 = vld [vmem:[%s1677_s1 + $0xa0] sm:$0xff]  ;;  %v66_v17 = vld [vmem:[%s1677_s1 + $0x108] sm:$0xff] }
   0x7   :  { %137 = vmatpush.msra.mxu2 %v65_v8  ;;  %155 = vmatpush.msra.mxu3 %v78_v11  ;;  %v45_v18 = vld [vmem:[%s1677_s1 + $0x60] sm:$0xff]  ;;  %v46_v19 = vld [vmem:[%s1677_s1 + $0x68] sm:$0xff]  ;;  %v47_v20 = vld [vmem:[%s1677_s1 + $0x70] sm:$0xff] }
   0x8   :  { %98 = vmatpush.msra.mxu0 %v57_v9  ;;  %118 = vmatpush.msra.mxu1 %v58_v10  ;;  %v60_v21 = vld [vmem:[%s1677_s1 + $0xd8] sm:$0xff]  ;;  %v81_v22 = vld [vmem:[%s1676_s0] sm:$0xff]  ;;  %v39_v23 = vld [vmem:[%s1677_s1 + $0x30] sm:$0xff] }
   0x9   :  { %138 = vmatpush.msra.mxu2 %v59_v12  ;;  %156 = vmatpush.msra.mxu3 %v72_v13  ;;  %v40_v24 = vld [vmem:[%s1677_s1 + $0x38] sm:$0xff]  ;;  %v41_v25 = vld [vmem:[%s1677_s1 + $0x40] sm:$0xff]  ;;  %v54_v26 = vld [vmem:[%s1677_s1 + $0xa8] sm:$0xff]  ;;  %v969_v29 = vcvt.s32.f32 %v81_v22 }
   0xa   :  { %99 = vmatpush.msra.mxu0 %v51_v14  ;;  %119 = vmatpush.msra.mxu1 %v52_v15  ;;  %v33_v27 = vld [vmem:[%s1677_s1] sm:$0xff]  ;;  %v34_v28 = vld [vmem:[%s1677_s1 + $0x8] sm:$0xff]  ;;  %v35_v30 = vld [vmem:[%s1677_s1 + $0x10] sm:$0xff] }
   0xb   :  { %139 = vmatpush.msra.mxu2 %v53_v16  ;;  %157 = vmatpush.msra.mxu3 %v66_v17  ;;  %v79_v31 = vld [vmem:[%s1677_s1 + $0x170] sm:$0xff]  ;;  %v48_v32 = vld [vmem:[%s1677_s1 + $0x78] sm:$0xff]  ;;  %v73_v35 = vld [vmem:[%s1677_s1 + $0x140] sm:$0xff] }
   0xc   :  { %100 = vmatpush.msra.mxu0 %v45_v18  ;;  %120 = vmatpush.msra.mxu1 %v46_v19  ;;  %v80_v33 = vld [vmem:[%s1677_s1 + $0x178] sm:$0xff]  ;;  %v275_v34 = vld [vmem:[%s1679_s3 + $0xf0] sm:$0xff]  ;;  %v42_v36 = vld [vmem:[%s1677_s1 + $0x48] sm:$0xff] }
   0xd   :  { %140 = vmatpush.msra.mxu2 %v47_v20  ;;  %158 = vmatpush.msra.mxu3 %v60_v21  ;;  %v74_v37 = vld [vmem:[%s1677_s1 + $0x148] sm:$0xff]  ;;  %v273_v38 = vld [vmem:[%s1679_s3 + $0xe0] sm:$0xff]  ;;  %v67_v39 = vld [vmem:[%s1677_s1 + $0x110] sm:$0xff] }
   0xe   :  { %101 = vmatpush.msra.mxu0 %v39_v23  ;;  %121 = vmatpush.msra.mxu1 %v40_v24  ;;  %v36_v40 = vld [vmem:[%s1677_s1 + $0x18] sm:$0xff]  ;;  %v61_v42 = vld [vmem:[%s1677_s1 + $0xe0] sm:$0xff]  ;;  %v271_v43 = vld [vmem:[%s1679_s3 + $0xd0] sm:$0xff] }
   0xf   :  { %141 = vmatpush.msra.mxu2 %v41_v25  ;;  %159 = vmatpush.msra.mxu3 %v54_v26  ;;  %v68_v41 = vld [vmem:[%s1677_s1 + $0x118] sm:$0xff]  ;;  %v62_v44 = vld [vmem:[%s1677_s1 + $0xe8] sm:$0xff]  ;;  %v55_v45 = vld [vmem:[%s1677_s1 + $0xb0] sm:$0xff] }
  0x10   :  { %102 = vmatpush.msra.mxu0 %v33_v27  ;;  %122 = vmatpush.msra.mxu1 %v34_v28  ;;  %v269_v46 = vld [vmem:[%s1679_s3 + $0xc0] sm:$0xff]  ;;  %v307_v47 = vld [vmem:[%s1679_s3 + $0x1f0] sm:$0xff]  ;;  %v56_v48 = vld [vmem:[%s1677_s1 + $0xb8] sm:$0xff] }
  0x11   :  { %142 = vmatpush.msra.mxu2 %v35_v30  ;;  %778 = vmatmul.msk.f32.vlgmr.msra.gmra.mxu0 %vm83_vm0, %v969_v29  ;;  %v305_v49 = vld [vmem:[%s1679_s3 + $0x1e0] sm:$0xff]  ;;  %v267_v51 = vld [vmem:[%s1679_s3 + $0xb0] sm:$0xff]  ;;  %v50_v52 = vld [vmem:[%s1677_s1 + $0x88] sm:$0xff] }
  0x12   :  { %779 = vmatmul.msk.f32.vlgmr.msra.gmra.mxu1 %vm83_vm0, %v969_v29  ;;  %780 = vmatmul.msk.f32.vlgmr.msra.gmra.mxu2 %vm83_vm0, %v969_v29  ;;  %v49_v50 = vld [vmem:[%s1677_s1 + $0x80] sm:$0xff]  ;;  %v303_v53 = vld [vmem:[%s1679_s3 + $0x1d0] sm:$0xff]  ;;  %v44_v56 = vld [vmem:[%s1677_s1 + $0x58] sm:$0xff] }
  0x13   :  { %175 = vmatpush.msrb.mxu0 %v79_v31  ;;  %160 = vmatpush.msra.mxu3 %v48_v32  ;;  %v43_v54 = vld [vmem:[%s1677_s1 + $0x50] sm:$0xff]  ;;  %v265_v55 = vld [vmem:[%s1679_s3 + $0xa0] sm:$0xff]  ;;  %v38_v60 = vld [vmem:[%s1677_s1 + $0x28] sm:$0xff] }
  0x14   :  { %195 = vmatpush.msrb.mxu1 %v80_v33  ;;  %417 = vmatpush.msrb.mxu2 %v275_v34  ;;  %v301_v57 = vld [vmem:[%s1679_s3 + $0x1c0] sm:$0xff]  ;;  %v263_v59 = vld [vmem:[%s1679_s3 + $0x90] sm:$0xff] }
  0x15   :  { %176 = vmatpush.msrb.mxu0 %v73_v35  ;;  %161 = vmatpush.msra.mxu3 %v42_v36  ;;  %v37_v58 = vld [vmem:[%s1677_s1 + $0x20] sm:$0xff]  ;;  %v339_v61 = vld [vmem:[%s1679_s3 + $0x2f0] sm:$0xff] }
  0x16   :  { %196 = vmatpush.msrb.mxu1 %v74_v37  ;;  %418 = vmatpush.msrb.mxu2 %v273_v38  ;;  %v261_v62 = vld [vmem:[%s1679_s3 + $0x80] sm:$0xff]  ;;  %v299_v63 = vld [vmem:[%s1679_s3 + $0x1b0] sm:$0xff] }
  0x17   :  { %177 = vmatpush.msrb.mxu0 %v67_v39  ;;  %162 = vmatpush.msra.mxu3 %v36_v40  ;;  %v337_v0 = vld [vmem:[%s1679_s3 + $0x2e0] sm:$0xff]  ;;  %v259_v1 = vld [vmem:[%s1679_s3 + $0x70] sm:$0xff] }
  0x18   :  { %197 = vmatpush.msrb.mxu1 %v68_v41  ;;  %781 = vmatmul.msk.f32.vlgmr.msra.gmra.mxu3 %vm83_vm0, %v969_v29  ;;  %v371_v2 = vld [vmem:[%s1679_s3 + $0x3f0] sm:$0xff]  ;;  %v297_v3 = vld [vmem:[%s1679_s3 + $0x1a0] sm:$0xff] }
  0x19   :  { %178 = vmatpush.msrb.mxu0 %v61_v42  ;;  %419 = vmatpush.msrb.mxu2 %v271_v43 }
  0x1a   :  { %198 = vmatpush.msrb.mxu1 %v62_v44  ;;  %437 = vmatpush.msrb.mxu3 %v307_v47 }
  0x1b   :  { %179 = vmatpush.msrb.mxu0 %v55_v45  ;;  %420 = vmatpush.msrb.mxu2 %v269_v46 }
  0x1c   :  { %199 = vmatpush.msrb.mxu1 %v56_v48  ;;  %438 = vmatpush.msrb.mxu3 %v305_v49 }
  0x1d   :  { %180 = vmatpush.msrb.mxu0 %v49_v50  ;;  %421 = vmatpush.msrb.mxu2 %v267_v51 }
  0x1e   :  { %200 = vmatpush.msrb.mxu1 %v50_v52  ;;  %439 = vmatpush.msrb.mxu3 %v303_v53 }
  0x1f   :  { %181 = vmatpush.msrb.mxu0 %v43_v54  ;;  %422 = vmatpush.msrb.mxu2 %v265_v55 }
  0x20   :  { %201 = vmatpush.msrb.mxu1 %v44_v56  ;;  %440 = vmatpush.msrb.mxu3 %v301_v57 }
  0x21   :  { %182 = vmatpush.msrb.mxu0 %v37_v58  ;;  %423 = vmatpush.msrb.mxu2 %v263_v59 }
  0x22   :  { %782 = vmatmul.msk.f32.vlgmr.msrb.gmra.mxu0 %vm83_vm0, %v969_v29  ;;  %202 = vmatpush.msrb.mxu1 %v38_v60 }
  0x23   :  { %783 = vmatmul.msk.f32.vlgmr.msrb.gmra.mxu1 %vm83_vm0, %v969_v29  ;;  %457 = vmatpush.msra.mxu0 %v339_v61 }
  0x24   :  { %14 = vsyncpa [#allocation3], 0  ;;  %v335_v4 = vld [vmem:[%s1679_s3 + $0x2d0] sm:$0xff]  ;;  %424 = vmatpush.msrb.mxu2 %v261_v62  ;;  %441 = vmatpush.msrb.mxu3 %v299_v63  ;;  %v369_v5 = vld [vmem:[%s1679_s3 + $0x3e0] sm:$0xff]  ;;  %vm413_vm6 = vcmask 64512   ;;  %vm681_vm8 = vcmask 130048  }
  0x25   :  { %458 = vmatpush.msra.mxu0 %v337_v0  ;;  %v257_v6 = vld [vmem:[%s1679_s3 + $0x60] sm:$0xff]  ;;  %477 = vmatpush.msra.mxu1 %v371_v2  ;;  %v295_v7 = vld [vmem:[%s1679_s3 + $0x190] sm:$0xff]  ;;  %v308_v46 = vld [vmem:[%s1679_s3 + $0x1f8] sm:$0xff]  ;;  %vm736_vm9 = vcmask 392192   ;;  %s831_s22 = smov [#allocation2]   ;;  %s769_s25 = sshll.u32 %s1685_s9, 4  ;;  %s770_s25 = int_to_ptr.hbm [resolvable:$true] %s769_s25 }
  0x26   :  { %v333_v8 = vld [vmem:[%s1679_s3 + $0x2c0] sm:$0xff]  ;;  %425 = vmatpush.msrb.mxu2 %v259_v1  ;;  %442 = vmatpush.msrb.mxu3 %v297_v3  ;;  %v367_v9 = vld [vmem:[%s1679_s3 + $0x3d0] sm:$0xff]  ;;  %v306_v48 = vld [vmem:[%s1679_s3 + $0x1e8] sm:$0xff]  ;;  %s767_s23 = sshll.u32 %s831_s22, 4  ;;  %vm760_vm10 = vcmask 146432   ;;  %s768_s23 = int_to_ptr.vmem [resolvable:$true] %s767_s23 }
  0x27   :  { %459 = vmatpush.msra.mxu0 %v335_v4  ;;  %v255_v10 = vld [vmem:[%s1679_s3 + $0x50] sm:$0xff]  ;;  %478 = vmatpush.msra.mxu1 %v369_v5  ;;  %v293_v11 = vld [vmem:[%s1679_s3 + $0x180] sm:$0xff]  ;;  %v304_v50 = vld [vmem:[%s1679_s3 + $0x1d8] sm:$0xff] }
  0x28   :  { %v331_v12 = vld [vmem:[%s1679_s3 + $0x2b0] sm:$0xff]  ;;  %426 = vmatpush.msrb.mxu2 %v257_v6  ;;  %443 = vmatpush.msrb.mxu3 %v295_v7  ;;  %v365_v13 = vld [vmem:[%s1679_s3 + $0x3c0] sm:$0xff]  ;;  %v302_v52 = vld [vmem:[%s1679_s3 + $0x1c8] sm:$0xff] }
  0x29   :  { %460 = vmatpush.msra.mxu0 %v333_v8  ;;  %v253_v14 = vld [vmem:[%s1679_s3 + $0x40] sm:$0xff]  ;;  %479 = vmatpush.msra.mxu1 %v367_v9  ;;  %v291_v15 = vld [vmem:[%s1679_s3 + $0x170] sm:$0xff]  ;;  %v300_v53 = vld [vmem:[%s1679_s3 + $0x1b8] sm:$0xff] }
  0x2a   :  { %v329_v16 = vld [vmem:[%s1679_s3 + $0x2a0] sm:$0xff]  ;;  %427 = vmatpush.msrb.mxu2 %v255_v10  ;;  %444 = vmatpush.msrb.mxu3 %v293_v11  ;;  %v363_v17 = vld [vmem:[%s1679_s3 + $0x3b0] sm:$0xff]  ;;  %v298_v54 = vld [vmem:[%s1679_s3 + $0x1a8] sm:$0xff] }
  0x2b   :  { %461 = vmatpush.msra.mxu0 %v331_v12  ;;  %v251_v18 = vld [vmem:[%s1679_s3 + $0x30] sm:$0xff]  ;;  %480 = vmatpush.msra.mxu1 %v365_v13  ;;  %v289_v19 = vld [vmem:[%s1679_s3 + $0x160] sm:$0xff]  ;;  %v296_v58 = vld [vmem:[%s1679_s3 + $0x198] sm:$0xff] }
  0x2c   :  { %v327_v20 = vld [vmem:[%s1679_s3 + $0x290] sm:$0xff]  ;;  %428 = vmatpush.msrb.mxu2 %v253_v14  ;;  %445 = vmatpush.msrb.mxu3 %v291_v15  ;;  %v361_v21 = vld [vmem:[%s1679_s3 + $0x3a0] sm:$0xff]  ;;  %v294_v62 = vld [vmem:[%s1679_s3 + $0x188] sm:$0xff] }
  0x2d   :  { %462 = vmatpush.msra.mxu0 %v329_v16  ;;  %v249_v22 = vld [vmem:[%s1679_s3 + $0x20] sm:$0xff]  ;;  %481 = vmatpush.msra.mxu1 %v363_v17  ;;  %v287_v23 = vld [vmem:[%s1679_s3 + $0x150] sm:$0xff]  ;;  %v292_v3 = vld [vmem:[%s1679_s3 + $0x178] sm:$0xff] }
  0x2e   :  { %v325_v24 = vld [vmem:[%s1679_s3 + $0x280] sm:$0xff]  ;;  %429 = vmatpush.msrb.mxu2 %v251_v18  ;;  %446 = vmatpush.msrb.mxu3 %v289_v19  ;;  %v359_v25 = vld [vmem:[%s1679_s3 + $0x390] sm:$0xff]  ;;  %v290_v6 = vld [vmem:[%s1679_s3 + $0x168] sm:$0xff] }
  0x2f   :  { %463 = vmatpush.msra.mxu0 %v327_v20  ;;  %v247_v26 = vld [vmem:[%s1679_s3 + $0x10] sm:$0xff]  ;;  %482 = vmatpush.msra.mxu1 %v361_v21  ;;  %v285_v27 = vld [vmem:[%s1679_s3 + $0x140] sm:$0xff]  ;;  %v288_v9 = vld [vmem:[%s1679_s3 + $0x158] sm:$0xff] }
  0x30   :  { %v323_v28 = vld [vmem:[%s1679_s3 + $0x270] sm:$0xff]  ;;  %430 = vmatpush.msrb.mxu2 %v249_v22  ;;  %447 = vmatpush.msrb.mxu3 %v287_v23  ;;  %v357_v29 = vld [vmem:[%s1679_s3 + $0x380] sm:$0xff]  ;;  %v286_v12 = vld [vmem:[%s1679_s3 + $0x148] sm:$0xff] }
  0x31   :  { %464 = vmatpush.msra.mxu0 %v325_v24  ;;  %v245_v30 = vld [vmem:[%s1679_s3] sm:$0xff]  ;;  %483 = vmatpush.msra.mxu1 %v359_v25  ;;  %v283_v31 = vld [vmem:[%s1679_s3 + $0x130] sm:$0xff]  ;;  %v284_v14 = vld [vmem:[%s1679_s3 + $0x138] sm:$0xff] }
  0x32   :  { %v321_v32 = vld [vmem:[%s1679_s3 + $0x260] sm:$0xff]  ;;  %431 = vmatpush.msrb.mxu2 %v247_v26  ;;  %v403_v33 = vld [vmem:[%s1679_s3 + $0x4f0] sm:$0xff]  ;;  %448 = vmatpush.msrb.mxu3 %v285_v27  ;;  %v282_v16 = vld [vmem:[%s1679_s3 + $0x128] sm:$0xff] }
  0x33   :  { %465 = vmatpush.msra.mxu0 %v323_v28  ;;  %484 = vmatpush.msra.mxu1 %v357_v29  ;;  %v319_v34 = vld [vmem:[%s1679_s3 + $0x250] sm:$0xff]  ;;  %v401_v35 = vld [vmem:[%s1679_s3 + $0x4e0] sm:$0xff]  ;;  %v340_v17 = vld [vmem:[%s1679_s3 + $0x2f8] sm:$0xff] }
  0x34   :  { %432 = vmatpush.msrb.mxu2 %v245_v30  ;;  %449 = vmatpush.msrb.mxu3 %v283_v31  ;;  %v317_v36 = vld [vmem:[%s1679_s3 + $0x240] sm:$0xff]  ;;  %v399_v37 = vld [vmem:[%s1679_s3 + $0x4d0] sm:$0xff]  ;;  %v280_v18 = vld [vmem:[%s1679_s3 + $0x118] sm:$0xff] }
  0x35   :  { %466 = vmatpush.msra.mxu0 %v321_v32  ;;  %v315_v38 = vld [vmem:[%s1679_s3 + $0x230] sm:$0xff]  ;;  %v397_v39 = vld [vmem:[%s1679_s3 + $0x4c0] sm:$0xff]  ;;  %v338_v19 = vld [vmem:[%s1679_s3 + $0x2e8] sm:$0xff] }
  0x36   :  { %497 = vmatpush.msra.mxu2 %v403_v33  ;;  %v313_v40 = vld [vmem:[%s1679_s3 + $0x220] sm:$0xff]  ;;  %v395_v41 = vld [vmem:[%s1679_s3 + $0x4b0] sm:$0xff]  ;;  %v278_v20 = vld [vmem:[%s1679_s3 + $0x108] sm:$0xff] }
  0x37   :  { %467 = vmatpush.msra.mxu0 %v319_v34  ;;  %v311_v42 = vld [vmem:[%s1679_s3 + $0x210] sm:$0xff]  ;;  %v393_v43 = vld [vmem:[%s1679_s3 + $0x4a0] sm:$0xff]  ;;  %v336_v21 = vld [vmem:[%s1679_s3 + $0x2d8] sm:$0xff] }
  0x38   :  { %498 = vmatpush.msra.mxu2 %v401_v35  ;;  %v309_v44 = vld [vmem:[%s1679_s3 + $0x200] sm:$0xff]  ;;  %v391_v45 = vld [vmem:[%s1679_s3 + $0x490] sm:$0xff]  ;;  %v334_v22 = vld [vmem:[%s1679_s3 + $0x2c8] sm:$0xff] }
  0x39   :  { %468 = vmatpush.msra.mxu0 %v317_v36  ;;  %v389_v47 = vld [vmem:[%s1679_s3 + $0x480] sm:$0xff]  ;;  %v387_v49 = vld [vmem:[%s1679_s3 + $0x470] sm:$0xff]  ;;  %v332_v23 = vld [vmem:[%s1679_s3 + $0x2b8] sm:$0xff] }
  0x3a   :  { %499 = vmatpush.msra.mxu2 %v399_v37  ;;  %v385_v51 = vld [vmem:[%s1679_s3 + $0x460] sm:$0xff]  ;;  %v355_v56 = vld [vmem:[%s1679_s3 + $0x370] sm:$0xff]  ;;  %v330_v25 = vld [vmem:[%s1679_s3 + $0x2a8] sm:$0xff] }
  0x3b   :  { %469 = vmatpush.msra.mxu0 %v315_v38  ;;  %v281_v55 = vld [vmem:[%s1679_s3 + $0x120] sm:$0xff]  ;;  %v383_v57 = vld [vmem:[%s1679_s3 + $0x450] sm:$0xff]  ;;  %485 = vmatpush.msra.mxu1 %v355_v56  ;;  %v328_v27 = vld [vmem:[%s1679_s3 + $0x298] sm:$0xff] }
  0x3c   :  { %500 = vmatpush.msra.mxu2 %v397_v39  ;;  %450 = vmatpush.msrb.mxu3 %v281_v55  ;;  %v279_v59 = vld [vmem:[%s1679_s3 + $0x110] sm:$0xff]  ;;  %v353_v60 = vld [vmem:[%s1679_s3 + $0x360] sm:$0xff]  ;;  %v326_v29 = vld [vmem:[%s1679_s3 + $0x288] sm:$0xff] }
  0x3d   :  { %470 = vmatpush.msra.mxu0 %v313_v40  ;;  %v381_v61 = vld [vmem:[%s1679_s3 + $0x440] sm:$0xff]  ;;  %486 = vmatpush.msra.mxu1 %v353_v60  ;;  %v351_v0 = vld [vmem:[%s1679_s3 + $0x350] sm:$0xff]  ;;  %v324_v33 = vld [vmem:[%s1679_s3 + $0x278] sm:$0xff] }
  0x3e   :  { %501 = vmatpush.msra.mxu2 %v395_v41  ;;  %451 = vmatpush.msrb.mxu3 %v279_v59  ;;  %v277_v63 = vld [vmem:[%s1679_s3 + $0x100] sm:$0xff]  ;;  %v379_v1 = vld [vmem:[%s1679_s3 + $0x430] sm:$0xff]  ;;  %v322_v36 = vld [vmem:[%s1679_s3 + $0x268] sm:$0xff] }
  0x3f   :  { %471 = vmatpush.msra.mxu0 %v311_v42  ;;  %v405_v2 = vld [vmem:[%s1679_s3 + $0x500] sm:$0xff]  ;;  %487 = vmatpush.msra.mxu1 %v351_v0  ;;  %v347_v7 = vld [vmem:[%s1679_s3 + $0x330] sm:$0xff]  ;;  %v372_v39 = vld [vmem:[%s1679_s3 + $0x3f8] sm:$0xff] }
  0x40   :  { %502 = vmatpush.msra.mxu2 %v393_v43  ;;  %452 = vmatpush.msrb.mxu3 %v277_v63  ;;  %v349_v4 = vld [vmem:[%s1679_s3 + $0x340] sm:$0xff]  ;;  %v375_v8 = vld [vmem:[%s1679_s3 + $0x410] sm:$0xff]  ;;  %v276_v41 = vld [vmem:[%s1679_s3 + $0xf8] sm:$0xff] }
  0x41   :  { %472 = vmatpush.msra.mxu0 %v309_v44  ;;  %v377_v5 = vld [vmem:[%s1679_s3 + $0x420] sm:$0xff]  ;;  %488 = vmatpush.msra.mxu1 %v349_v4  ;;  %v343_v13 = vld [vmem:[%s1679_s3 + $0x310] sm:$0xff]  ;;  %v320_v42 = vld [vmem:[%s1679_s3 + $0x258] sm:$0xff]  ;;  %v829_v44 = vmov 1.0  }
  0x42   :  { %503 = vmatpush.msra.mxu2 %v391_v45  ;;  %532 = vmatpush.msra.mxu3 %v405_v2  ;;  %v345_v10 = vld [vmem:[%s1679_s3 + $0x320] sm:$0xff]  ;;  %v370_v45 = vld [vmem:[%s1679_s3 + $0x3e8] sm:$0xff]  ;;  %v316_v55 = vld [vmem:[%s1679_s3 + $0x238] sm:$0xff] }
  0x43   :  { %557 = vmatpush.msrb.mxu0 %v308_v46  ;;  %489 = vmatpush.msra.mxu1 %v347_v7  ;;  %v373_v11 = vld [vmem:[%s1679_s3 + $0x400] sm:$0xff]  ;;  %v270_v56 = vld [vmem:[%s1679_s3 + $0xc8] sm:$0xff]  ;;  %v364_v59 = vld [vmem:[%s1679_s3 + $0x3b8] sm:$0xff] }
  0x44   :  { %504 = vmatpush.msra.mxu2 %v389_v47  ;;  %v341_v15 = vld [vmem:[%s1679_s3 + $0x300] sm:$0xff]  ;;  %v274_v47 = vld [vmem:[%s1679_s3 + $0xe8] sm:$0xff]  ;;  %v312_v2 = vld [vmem:[%s1679_s3 + $0x218] sm:$0xff] }
  0x45   :  { %558 = vmatpush.msrb.mxu0 %v306_v48  ;;  %490 = vmatpush.msra.mxu1 %v345_v10  ;;  %v1352_v24 = vld [vmem:[%s1678_s2] sm:$0x3f]  ;;  %v314_v60 = vld [vmem:[%s1679_s3 + $0x228] sm:$0xff]  ;;  %v400_v40 = vld [vmem:[%s1679_s3 + $0x4d8] sm:$0xff] }
  0x46   :  { %505 = vmatpush.msra.mxu2 %v387_v49  ;;  %v209_v26 = vperm.slane %v1352_v24, 0  ;;  %v210_v28 = vperm.slane %v1352_v24, 1  ;;  %v211_v38 = vperm.slane %v1352_v24, 2  ;;  %v368_v49 = vld [vmem:[%s1679_s3 + $0x3d8] sm:$0xff]  ;;  %v213_v0 = vperm.slane %v1352_v24, 4  ;;  %v266_v4 = vld [vmem:[%s1679_s3 + $0xa8] sm:$0xff] }
  0x47   :  { %559 = vmatpush.msrb.mxu0 %v304_v50  ;;  %491 = vmatpush.msra.mxu1 %v343_v13  ;;  %v318_v50 = vld [vmem:[%s1679_s3 + $0x248] sm:$0xff] }
  0x48   :  { %506 = vmatpush.msra.mxu2 %v385_v51  ;;  %v272_v51 = vld [vmem:[%s1679_s3 + $0xd8] sm:$0xff]  ;;  %v358_v13 = vld [vmem:[%s1679_s3 + $0x388] sm:$0xff] }
  0x49   :  { %560 = vmatpush.msrb.mxu0 %v302_v52  ;;  %492 = vmatpush.msra.mxu1 %v341_v15  ;;  %v262_v15 = vld [vmem:[%s1679_s3 + $0x88] sm:$0xff] }
  0x4a   :  { %507 = vmatpush.msra.mxu2 %v383_v57  ;;  %v406_v57 = vld [vmem:[%s1679_s3 + $0x508] sm:$0xff] }
  0x4b   :  { %561 = vmatpush.msrb.mxu0 %v300_v53  ;;  %577 = vmatpush.msrb.mxu1 %v340_v17  ;;  %v212_v53 = vperm.slane %v1352_v24, 3  ;;  %v398_v43 = vld [vmem:[%s1679_s3 + $0x4c8] sm:$0xff] }
  0x4c   :  { %508 = vmatpush.msra.mxu2 %v381_v61 }
  0x4d   :  { %562 = vmatpush.msrb.mxu0 %v298_v54  ;;  %578 = vmatpush.msrb.mxu1 %v338_v19  ;;  %v366_v54 = vld [vmem:[%s1679_s3 + $0x3c8] sm:$0xff]  ;;  %v356_v19 = vld [vmem:[%s1679_s3 + $0x378] sm:$0xff] }
  0x4e   :  { %509 = vmatpush.msra.mxu2 %v379_v1  ;;  %v362_v1 = vld [vmem:[%s1679_s3 + $0x3a8] sm:$0xff] }
  0x4f   :  { %563 = vmatpush.msrb.mxu0 %v296_v58  ;;  %579 = vmatpush.msrb.mxu1 %v336_v21  ;;  %v258_v21 = vld [vmem:[%s1679_s3 + $0x68] sm:$0xff] }
  0x50   :  { %510 = vmatpush.msra.mxu2 %v377_v5  ;;  %v374_v58 = vld [vmem:[%s1679_s3 + $0x408] sm:$0xff] }
  0x51   :  { %564 = vmatpush.msrb.mxu0 %v294_v62  ;;  %580 = vmatpush.msrb.mxu1 %v334_v22  ;;  %v268_v62 = vld [vmem:[%s1679_s3 + $0xb8] sm:$0xff]  ;;  %v354_v22 = vld [vmem:[%s1679_s3 + $0x368] sm:$0xff] }
  0x52   :  { %511 = vmatpush.msra.mxu2 %v375_v8  ;;  %v264_v8 = vld [vmem:[%s1679_s3 + $0x98] sm:$0xff] }
  0x53   :  { %565 = vmatpush.msrb.mxu0 %v292_v3  ;;  %581 = vmatpush.msrb.mxu1 %v332_v23  ;;  %v214_v3 = vperm.slane %v1352_v24, 5  ;;  %v830_v23 = vmov 0.0  }
  0x54   :  { %512 = vmatpush.msra.mxu2 %v373_v11 }
  0x55   :  { %566 = vmatpush.msrb.mxu0 %v290_v6  ;;  %582 = vmatpush.msrb.mxu1 %v330_v25  ;;  %v360_v6 = vld [vmem:[%s1679_s3 + $0x398] sm:$0xff] }
  0x56   :  { %v256_v25 = vld [vmem:[%s1679_s3 + $0x58] sm:$0xff] }
  0x57   :  { %567 = vmatpush.msrb.mxu0 %v288_v9  ;;  %583 = vmatpush.msrb.mxu1 %v328_v27  ;;  %v310_v9 = vld [vmem:[%s1679_s3 + $0x208] sm:$0xff] }
  0x58   :  { %v254_v27 = vld [vmem:[%s1679_s3 + $0x48] sm:$0xff] }
  0x59   :  { %568 = vmatpush.msrb.mxu0 %v286_v12  ;;  %584 = vmatpush.msrb.mxu1 %v326_v29  ;;  %v252_v29 = vld [vmem:[%s1679_s3 + $0x38] sm:$0xff] }
  0x5b   :  { %569 = vmatpush.msrb.mxu0 %v284_v14  ;;  %585 = vmatpush.msrb.mxu1 %v324_v33  ;;  %v248_v33 = vld [vmem:[%s1679_s3 + $0x18] sm:$0xff] }
  0x5d   :  { %570 = vmatpush.msrb.mxu0 %v282_v16  ;;  %586 = vmatpush.msrb.mxu1 %v322_v36  ;;  %v342_v36 = vld [vmem:[%s1679_s3 + $0x308] sm:$0xff] }
  0x5f   :  { %571 = vmatpush.msrb.mxu0 %v280_v18  ;;  %587 = vmatpush.msrb.mxu1 %v320_v42  ;;  %v260_v18 = vld [vmem:[%s1679_s3 + $0x78] sm:$0xff]  ;;  %v672_v42 = vld [vmem:[%s1681_s5 + $0x68] sm:$0xff] }
  0x61   :  { %572 = vmatpush.msrb.mxu0 %v278_v20  ;;  %588 = vmatpush.msrb.mxu1 %v318_v50  ;;  %v390_v50 = vld [vmem:[%s1679_s3 + $0x488] sm:$0xff] }
  0x63   :  { %589 = vmatpush.msrb.mxu1 %v316_v55  ;;  %v380_v55 = vld [vmem:[%s1679_s3 + $0x438] sm:$0xff] }
  0x65   :  { %590 = vmatpush.msrb.mxu1 %v314_v60  ;;  %v668_v60 = vld [vmem:[%s1681_s5 + $0x48] sm:$0xff] }
  0x67   :  { %591 = vmatpush.msrb.mxu1 %v312_v2  ;;  %v661_v2 = vld [vmem:[%s1681_s5 + $0x10] sm:$0xff] }
  0x69   :  { %592 = vmatpush.msrb.mxu1 %v310_v9 }
  0x8e   :  { %v104_v30 = vpop.f32.mrf.mxu0 }
  0x8f   :  { %v221_v31 = vsub.f32 %v104_v30, %v209_v26  ;;  %v124_v32 = vpop.f32.mrf.mxu1  ;;  %v352_v26 = vld [vmem:[%s1679_s3 + $0x358] sm:$0xff] }
  0x90   :  { %v222_v34 = vsub.f32 %v124_v32, %v210_v28  ;;  %v350_v28 = vld [vmem:[%s1679_s3 + $0x348] sm:$0xff]  ;;  %v348_v30 = vld [vmem:[%s1679_s3 + $0x338] sm:$0xff] }
  0x91   :  { %v227_v35 = vand.u32 2147483647, %v221_v31  ;;  %v250_v31 = vld [vmem:[%s1679_s3 + $0x28] sm:$0xff] }
  0x92   :  { %v228_v37 = vand.u32 2147483647, %v222_v34  ;;  %v346_v32 = vld [vmem:[%s1679_s3 + $0x328] sm:$0xff]  ;;  %v344_v34 = vld [vmem:[%s1679_s3 + $0x318] sm:$0xff] }
  0x93   :  { %vm1375_vm1 = vcmp.lt.f32.partialorder %v227_v35, 0.5  ;;  %v246_v35 = vld [vmem:[%s1679_s3 + $0x8] sm:$0xff] }
  0x94   :  { %vm1385_vm2 = vcmp.lt.f32.partialorder %v228_v37, 0.5  ;;  %784 = vmatmul.msk.f32.vlgmr.msrb.gmra.mxu2 %vm1375_vm1, %v829_v44  ;;  %v404_v37 = vld [vmem:[%s1679_s3 + $0x4f8] sm:$0xff] }
  0x95   :  { %v144_v46 = vpop.f32.mrf.mxu2  ;;  %785 = vmatmul.msk.f32.vlgmr.msrb.gmra.mxu3 %vm1385_vm2, %v829_v44  ;;  %597 = vmatpush.msrb.mxu2 %v372_v39  ;;  %v674_v39 = vld [vmem:[%s1681_s5 + $0x78] sm:$0xff] }
  0x96   :  { %v223_v48 = vsub.f32 %v144_v46, %v211_v38  ;;  %537 = vmatpush.msrb.mxu3 %v276_v41  ;;  %v402_v38 = vld [vmem:[%s1679_s3 + $0x4e8] sm:$0xff]  ;;  %v673_v41 = vld [vmem:[%s1681_s5 + $0x70] sm:$0xff]  ;;  %v396_v46 = vld [vmem:[%s1679_s3 + $0x4b8] sm:$0xff] }
  0x97   :  { %598 = vmatpush.msrb.mxu2 %v370_v45  ;;  %v671_v45 = vld [vmem:[%s1681_s5 + $0x60] sm:$0xff] }
  0x98   :  { %v229_v52 = vand.u32 2147483647, %v223_v48  ;;  %538 = vmatpush.msrb.mxu3 %v274_v47  ;;  %v670_v47 = vld [vmem:[%s1681_s5 + $0x58] sm:$0xff]  ;;  %v394_v48 = vld [vmem:[%s1679_s3 + $0x4a8] sm:$0xff] }
  0x99   :  { %599 = vmatpush.msrb.mxu2 %v368_v49  ;;  %v392_v49 = vld [vmem:[%s1679_s3 + $0x498] sm:$0xff] }
  0x9a   :  { %vm1423_vm3 = vcmp.lt.f32.partialorder %v229_v52, 0.5  ;;  %539 = vmatpush.msrb.mxu3 %v272_v51  ;;  %v388_v51 = vld [vmem:[%s1679_s3 + $0x478] sm:$0xff]  ;;  %v386_v52 = vld [vmem:[%s1679_s3 + $0x468] sm:$0xff] }
  0x9b   :  { %v164_v61 = vpop.f32.mrf.mxu3  ;;  %786 = vmatmul.msk.f32.vlgmr.msra.gmra.mxu0 %vm1423_vm3, %v829_v44  ;;  %600 = vmatpush.msrb.mxu2 %v366_v54  ;;  %v382_v54 = vld [vmem:[%s1679_s3 + $0x448] sm:$0xff] }
  0x9c   :  { %v224_v63 = vsub.f32 %v164_v61, %v212_v53  ;;  %540 = vmatpush.msrb.mxu3 %v270_v56  ;;  %652 = vmatpush.msra.mxu0 %v406_v57  ;;  %v384_v53 = vld [vmem:[%s1679_s3 + $0x458] sm:$0xff]  ;;  %v378_v56 = vld [vmem:[%s1679_s3 + $0x428] sm:$0xff]  ;;  %v667_v61 = vld [vmem:[%s1681_s5 + $0x40] sm:$0xff] }
  0x9d   :  { %601 = vmatpush.msrb.mxu2 %v364_v59  ;;  %v376_v57 = vld [vmem:[%s1679_s3 + $0x418] sm:$0xff]  ;;  %v669_v59 = vld [vmem:[%s1681_s5 + $0x50] sm:$0xff] }
  0x9e   :  { %v230_v5 = vand.u32 2147483647, %v224_v63  ;;  %541 = vmatpush.msrb.mxu3 %v268_v62  ;;  %v666_v62 = vld [vmem:[%s1681_s5 + $0x38] sm:$0xff]  ;;  %v664_v63 = vld [vmem:[%s1681_s5 + $0x28] sm:$0xff] }
  0x9f   :  { %v184_v7 = vpop.f32.mrf.mxu0  ;;  %602 = vmatpush.msrb.mxu2 %v362_v1  ;;  %v662_v1 = vld [vmem:[%s1681_s5 + $0x18] sm:$0xff] }
  0xa0   :  { %vm1459_vm4 = vcmp.lt.f32.partialorder %v230_v5, 0.5  ;;  %v225_v11 = vsub.f32 %v184_v7, %v213_v0  ;;  %v204_v12 = vpop.f32.mrf.mxu1  ;;  %542 = vmatpush.msrb.mxu3 %v266_v4  ;;  %v663_v0 = vld [vmem:[%s1681_s5 + $0x20] sm:$0xff] }
  0xa1   :  { %v226_v14 = vsub.f32 %v204_v12, %v214_v3  ;;  %787 = vmatmul.msk.f32.vlgmr.msra.gmra.mxu1 %vm1459_vm4, %v829_v44  ;;  %603 = vmatpush.msrb.mxu2 %v360_v6  ;;  %v660_v3 = vld [vmem:[%s1681_s5 + $0x8] sm:$0xff]  ;;  %v659_v4 = vld [vmem:[%s1681_s5] sm:$0xff] }
  0xa2   :  { %v231_v16 = vand.u32 2147483647, %v225_v11  ;;  %543 = vmatpush.msrb.mxu3 %v264_v8  ;;  %685 = vmatpush.msra.mxu1 %v674_v39  ;;  %v407_v5 = vld [vmem:[%s1680_s4] sm:$0x3]  ;;  %v676_v11 = vld [vmem:[%s1681_s5 + $0x88] sm:$0xff]  ;;  %v728_v39 = vld [vmem:[%s1683_s7 + $0x10] sm:$0xff] }
  0xa3   :  { %v232_v17 = vand.u32 2147483647, %v226_v14  ;;  %791 = vmatmul.msk.f32.vlgmr.msrb.gmra.mxu0 %vm1385_vm2, %v829_v44  ;;  %604 = vmatpush.msrb.mxu2 %v358_v13  ;;  %v409_v6 = vperm.slane %v407_v5, 0 }
  0xa4   :  { %vm1481_vm5 = vcmp.lt.f32.partialorder %v231_v16, 0.5  ;;  %544 = vmatpush.msrb.mxu3 %v262_v15  ;;  %686 = vmatpush.msra.mxu1 %v673_v41  ;;  %v727_v41 = vld [vmem:[%s1683_s7 + $0x8] sm:$0xff] }
  0xa5   :  { %vm238_vm7 = vcmp.lt.f32.partialorder %v232_v17, 0.5  ;;  %788 = vmatmul.msk.f32.vlgmr.msra.gmra.mxu2 %vm1481_vm5, %v829_v44  ;;  %719 = vmatpush.msrb.mxu0 %v676_v11 }
  0xa6   :  { %v244_v24 = vsel %vm238_vm7, 1.0, %v830_v23  ;;  %545 = vmatpush.msrb.mxu3 %v260_v18  ;;  %605 = vmatpush.msrb.mxu2 %v356_v19 }
  0xa7   :  { %789 = vmatmul.msk.f32.vlgmr.msra.gmra.mxu3 %vm413_vm6, %v244_v24  ;;  %687 = vmatpush.msra.mxu1 %v672_v42  ;;  %v801_v42 = vld [vmem:[%s1682_s6] ss:$0 sm:$0xff] }
  0xa8   :  { %546 = vmatpush.msrb.mxu3 %v258_v21  ;;  %606 = vmatpush.msrb.mxu2 %v354_v22  ;;  %v675_v21 = vld [vmem:[%s1681_s5 + $0x80] sm:$0xff]  ;;  %v410_v22 = vperm.slane %v407_v5, 1 }
  0xa9   :  { %792 = vmatmul.msk.f32.vlgmr.msrb.gmra.mxu1 %vm1423_vm3, %v829_v44  ;;  %720 = vmatpush.msrb.mxu0 %v675_v21 }
  0xaa   :  { %547 = vmatpush.msrb.mxu3 %v256_v25  ;;  %607 = vmatpush.msrb.mxu2 %v352_v26 }
  0xab   :  { %795 = vmatmul.msk.f32.vlgmr.msra.gmra.mxu0 %vm413_vm6, %v244_v24  ;;  %688 = vmatpush.msra.mxu1 %v671_v45 }
  0xac   :  { %548 = vmatpush.msrb.mxu3 %v254_v27  ;;  %608 = vmatpush.msrb.mxu2 %v350_v28 }
  0xad   :  { %689 = vmatpush.msra.mxu1 %v670_v47 }
  0xae   :  { %549 = vmatpush.msrb.mxu3 %v252_v29  ;;  %609 = vmatpush.msrb.mxu2 %v348_v30 }
  0xaf   :  { %690 = vmatpush.msra.mxu1 %v669_v59 }
  0xb0   :  { %550 = vmatpush.msrb.mxu3 %v250_v31  ;;  %610 = vmatpush.msrb.mxu2 %v346_v32 }
  0xb1   :  { %691 = vmatpush.msra.mxu1 %v668_v60 }
  0xb2   :  { %551 = vmatpush.msrb.mxu3 %v248_v33  ;;  %611 = vmatpush.msrb.mxu2 %v344_v34 }
  0xb3   :  { %692 = vmatpush.msra.mxu1 %v667_v61 }
  0xb4   :  { %552 = vmatpush.msrb.mxu3 %v246_v35  ;;  %612 = vmatpush.msrb.mxu2 %v342_v36  ;;  %v731_v36 = vld [vmem:[%s1683_s7 + $0x28] sm:$0xff] }
  0xb5   :  { %790 = vmatmul.msk.f32.vlgmr.msrb.gmra.mxu3 %vm1375_vm1, %v829_v44  ;;  %793 = vmatmul.msk.f32.vlgmr.msrb.gmra.mxu2 %vm1459_vm4, %v829_v44 }
  0xb6   :  { %617 = vmatpush.msra.mxu3 %v404_v37  ;;  %693 = vmatpush.msra.mxu1 %v666_v62  ;;  %v730_v37 = vld [vmem:[%s1683_s7 + $0x20] sm:$0xff] }
  0xb7   :  { %750 = vmatpush.msra.mxu0 %v731_v36 }
  0xb8   :  { %618 = vmatpush.msra.mxu3 %v402_v38  ;;  %v729_v38 = vld [vmem:[%s1683_s7 + $0x18] sm:$0xff] }
  0xb9   :  { %751 = vmatpush.msra.mxu0 %v730_v37 }
  0xba   :  { %619 = vmatpush.msra.mxu3 %v400_v40  ;;  %v726_v40 = vld [vmem:[%s1683_s7] sm:$0xff] }
  0xbb   :  { %752 = vmatpush.msra.mxu0 %v729_v38 }
  0xbc   :  { %620 = vmatpush.msra.mxu3 %v398_v43 }
  0xbd   :  { %753 = vmatpush.msra.mxu0 %v728_v39 }
  0xbe   :  { %621 = vmatpush.msra.mxu3 %v396_v46 }
  0xbf   :  { %754 = vmatpush.msra.mxu0 %v727_v41 }
  0xc0   :  { %622 = vmatpush.msra.mxu3 %v394_v48 }
  0xc1   :  { %755 = vmatpush.msra.mxu0 %v726_v40 }
  0xc2   :  { %623 = vmatpush.msra.mxu3 %v392_v49  ;;  %v802_v49 = vld [vmem:[%s1684_s8] ss:$0 sm:$0xff] }
  0xc4   :  { %624 = vmatpush.msra.mxu3 %v390_v50 }
  0xc6   :  { %625 = vmatpush.msra.mxu3 %v388_v51 }
  0xc8   :  { %626 = vmatpush.msra.mxu3 %v386_v52 }
  0xca   :  { %627 = vmatpush.msra.mxu3 %v384_v53 }
  0xcc   :  { %628 = vmatpush.msra.mxu3 %v382_v54 }
  0xce   :  { %629 = vmatpush.msra.mxu3 %v380_v55 }
  0xd0   :  { %630 = vmatpush.msra.mxu3 %v378_v56 }
  0xd2   :  { %631 = vmatpush.msra.mxu3 %v376_v57 }
  0xd4   :  { %632 = vmatpush.msra.mxu3 %v374_v58 }
  0xd5   :  { %794 = vmatmul.msk.f32.vlgmr.msra.gmra.mxu3 %vm1481_vm5, %v829_v44  ;;  %v665_v44 = vld [vmem:[%s1681_s5 + $0x30] sm:$0xff] }
  0xd6   :  { %694 = vmatpush.msra.mxu1 %v665_v44 }
  0xd8   :  { %695 = vmatpush.msra.mxu1 %v664_v63 }
  0xda   :  { %696 = vmatpush.msra.mxu1 %v663_v0 }
  0xdc   :  { %697 = vmatpush.msra.mxu1 %v662_v1 }
  0xde   :  { %698 = vmatpush.msra.mxu1 %v661_v2 }
  0xe0   :  { %699 = vmatpush.msra.mxu1 %v660_v3 }
  0xe2   :  { %700 = vmatpush.msra.mxu1 %v659_v4 }
 0x117   :  { %v434_v7 = vpop.f32.mrf.mxu2 }
 0x118   :  { %v435_v8 = vadd.f32 %v434_v7, %v409_v6  ;;  %v454_v9 = vpop.f32.mrf.mxu3  ;;  %v474_v12 = vpop.f32.mrf.mxu0 }
 0x11a   :  { %v455_v10 = vadd.f32 %v454_v9, %v435_v8 }
 0x11c   :  { %v475_v13 = vadd.f32 %v474_v12, %v455_v10 }
 0x11e   :  { %v494_v14 = vpop.f32.mrf.mxu1 }
 0x11f   :  { %v495_v15 = vadd.f32 %v494_v14, %v475_v13 }
 0x120   :  { %v574_v25 = vpop.f32.mrf.mxu0 }
 0x126   :  { %v594_v27 = vpop.f32.mrf.mxu1 }
 0x128   :  { %v514_v16 = vpop.f32.mrf.mxu2  ;;  %v654_v33 = vpop.f32.mrf.mxu0 }
 0x129   :  { %v515_v17 = vadd.f32 %v514_v16, %v495_v15 }
 0x12a   :  { %v534_v18 = vpop.f32.mrf.mxu3 }
 0x12b   :  { %v535_v19 = vadd.f32 %v534_v18, %v515_v17 }
 0x12d   :  { %v657_v20 = vmax.f32 %v535_v19, 0.0 }
 0x12f   :  { %701 = vmatmul.f32.vlgmr.msra.gmra.mxu1 %v657_v20 }
 0x138   :  { %v554_v23 = vpop.f32.mrf.mxu3  ;;  %v614_v29 = vpop.f32.mrf.mxu2 }
 0x139   :  { %v555_v24 = vadd.f32 %v554_v23, %v410_v22 }
 0x13b   :  { %v575_v26 = vadd.f32 %v574_v25, %v555_v24 }
 0x13d   :  { %v595_v28 = vadd.f32 %v594_v27, %v575_v26 }
 0x13f   :  { %v615_v30 = vadd.f32 %v614_v29, %v595_v28 }
 0x158   :  { %v634_v31 = vpop.f32.mrf.mxu3 }
 0x159   :  { %v635_v32 = vadd.f32 %v634_v31, %v615_v30 }
 0x15b   :  { %v655_v34 = vadd.f32 %v654_v33, %v635_v32 }
 0x15d   :  { %v658_v35 = vmax.f32 %v655_v34, 0.0 }
 0x15f   :  { %796 = vmatmul.msk.f32.vlgmr.msrb.gmra.mxu0 %vm681_vm8, %v658_v35 }
 0x1ac   :  { %v702_v43 = vpop.f32.mrf.mxu1 }
 0x1ad   :  { %v703_v45 = vadd.f32 %v801_v42, %v702_v43 }
 0x1dc   :  { %v722_v46 = vpop.f32.mrf.mxu0 }
 0x1dd   :  { %v723_v47 = vadd.f32 %v722_v46, %v703_v45 }
 0x1df   :  { %v725_v48 = vmax.f32 %v723_v47, 0.0 }
 0x1e1   :  { %797 = vmatmul.msk.f32.vlgmr.msra.gmra.mxu0 %vm736_vm9, %v725_v48 }
 0x25e   :  { %v757_v50 = vpop.f32.mrf.mxu0 }
 0x25f   :  { %v758_v51 = vadd.f32 %v802_v49, %v757_v50 }
 0x261   :  { %761 = vst.msk [vmem:[#allocation2] sm:$0xff] %vm760_vm10, %v758_v51 }
 0x262   :  { %772 = dma.vmem_to_hbm [thread:$0]  %s768_s23, 128, %s770_s25, [#allocation3]  }
 0x263   :  { %827 = dma.done.wait [#allocation3], 128  }
 0x264   :  { %828 = vsyncadd [#allocation3], 4294967168 }
 0x265   :  { %777 = vsyncpa [#allocation3], 1 }

</bundles_post_ra>
